<compile_context>
chip_gen: v6e
topology: v6e:2x2x1
jax: 0.10.0
libtpu: 0.0.40
codegen_flags: <defaults>
</compile_context>

<pallas_src>
import functools

import jax
import jax.numpy as jnp
import numpy as np
from jax.experimental import pallas as pl
from jax.experimental.pallas import tpu as pltpu


def _phase_decomposition(K, S, pad):
    """Static polyphase tap table: taps[r] = [(k, m), ...] where
    k - pad = m*S + r, i.e. output index j = l*S + (k - pad) = (l + m)*S + r."""
    taps = [[] for _ in range(S)]
    for k in range(K):
        d = k - pad
        r = d % S
        m = (d - r) // S
        taps[r].append((k, m))
    return taps


def _make_kernel(*, BN, C, L, S, T, lp, taps):
    starts = sorted({lp - m for r in range(S) for (_k, m) in taps[r]})

    def kernel(x_ref, w_ref, b_ref, o_ref):
        # x_ref: (BN, C, Lp)  raw input + edge zero-padding (VMEM)
        # w_ref: (S*T*C,)     per-(phase, tap, channel) weights (SMEM scalars)
        # b_ref: (1,)         scalar bias (SMEM)
        # o_ref: (BN, S, L)   phase-major output slab, L on lanes
        b = b_ref[0]
        # Hoist the few distinct shifted views of x out of the tap loop.
        views = {s0: x_ref[:, :, pl.ds(s0, L)] for s0 in starts}   # each (BN, C, L)
        for r in range(S):                         # static unroll, S small
            acc = jnp.zeros((BN, L), jnp.float32)
            for t, (_k, m) in enumerate(taps[r]):
                xs = views[lp - m]
                for c in range(C):                 # VPU broadcast-FMA, scalar weight
                    w = w_ref[(r * T + t) * C + c]
                    acc = acc + w * xs[:, c, :].astype(jnp.float32)
            o_ref[:, r, :] = (acc + b).astype(o_ref.dtype)

    return kernel


def dirac_delta_trans_conv(x, kernel1d, bias, *, kernel_size, stride,
                           output_padding=4, use_bias=True):
    """Pallas implementation of DiracDeltaTransConvLayer.forward.

    x:         (N, C, L) float32, C == num_filter
    kernel1d:  (C, 1, K) float32 (conv_transpose1d weight, out_channels = 1)
    bias:      (1,) float32 (or None)
    returns    (N, 1, L_out) float32
    """
    N, C, L = x.shape
    K, S = kernel_size, stride
    pad = K // 2
    L_out = (L - 1) * S - 2 * pad + (K - 1) + output_padding + 1
    if L * S < L_out:
        raise ValueError("output_padding must be < stride (PyTorch constraint)")

    # ---- static polyphase tables (pure Python / numpy) ----
    taps = _phase_decomposition(K, S, pad)
    T = max(1, max(len(t) for t in taps))
    m_all = [m for r in range(S) for (_k, m) in taps[r]]
    lp = max(0, max(m_all))            # left zero pad so x[l'-m] reads stay in range
    rp = max(0, -min(m_all))           # right zero pad for m < 0
    Lp = L + lp + rp
    x_pad = jnp.pad(x, ((0, 0), (0, 0), (lp, rp)))

    # (S, T, C) weight table -> flat SMEM vector (dummy taps get weight 0).
    w2 = kernel1d.reshape(C, K).astype(jnp.float32)          # (in_channels, K)
    k_idx = np.zeros((S, T), np.int32)
    valid = np.zeros((S, T), np.float32)
    for r in range(S):
        for t, (k, _m) in enumerate(taps[r]):
            k_idx[r, t] = k
            valid[r, t] = 1.0
    wsel = (w2.T[k_idx] * jnp.asarray(valid)[..., None]).reshape(-1)   # (S*T*C,)

    if use_bias and bias is not None:
        b = bias.reshape(1).astype(jnp.float32)
    else:
        b = jnp.zeros((1,), jnp.float32)

    BN = N if N <= 8 else 8            # batch rows per grid step
    grid = (pl.cdiv(N, BN),)

    phases = pl.pallas_call(
        _make_kernel(BN=BN, C=C, L=L, S=S, T=T, lp=lp, taps=taps),
        out_shape=jax.ShapeDtypeStruct((N, S, L), x.dtype),
        grid=grid,
        in_specs=[
            pl.BlockSpec((BN, C, Lp), lambda n: (n, 0, 0)),
            pl.BlockSpec(memory_space=pltpu.MemorySpace.SMEM),   # weights (scalars)
            pl.BlockSpec(memory_space=pltpu.MemorySpace.SMEM),   # bias
        ],
        out_specs=pl.BlockSpec((BN, S, L), lambda n: (n, 0, 0)),
        compiler_params=pltpu.CompilerParams(
            dimension_semantics=("parallel",)),
    )(x_pad, wsel, b)

    # Layout plumbing only: interleave the S phases back to (N, 1, L_out).
    out = jnp.transpose(phases, (0, 2, 1)).reshape(N, L * S)[:, :L_out]
    return out.reshape(N, 1, L_out)


def init_params(kernel_size, num_filter, use_bias=True):
    """Deterministic parameter init matching the PyTorch module's __init__."""
    kernel1d = jnp.zeros((num_filter, 1, kernel_size), jnp.float32)
    kernel1d = kernel1d.at[:, 0, kernel_size // 2].set(1.0)   # Dirac delta
    bias = jnp.zeros((1,), jnp.float32) if use_bias else None
    return kernel1d, bias


def _reference_numpy(x, kernel1d, bias, kernel_size, stride, output_padding=4):
    """Direct conv_transpose1d reference (PyTorch semantics)."""
    x = np.asarray(x, np.float32)
    w = np.asarray(kernel1d, np.float32).reshape(x.shape[1], kernel_size)
    N, C, L = x.shape
    K, S, pad = kernel_size, stride, kernel_size // 2
    L_out = (L - 1) * S - 2 * pad + (K - 1) + output_padding + 1
    out = np.zeros((N, 1, L_out), np.float32)
    for n in range(N):
        for ci in range(C):
            for l in range(L):
                for k in range(K):
                    j = l * S - pad + k
                    if 0 <= j < L_out:
                        out[n, 0, j] += x[n, ci, l] * w[ci, k]
    if bias is not None:
        out += float(np.asarray(bias)[0])
    return out


if __name__ == "__main__":
    # Module hyper-params.  PyTorch requires output_padding(=4) < stride,
    # so a valid configuration needs stride >= 5.
    kernel_size = 5
    num_filter = 4
    stride = 5

    N, L = 2, 16
    key = jax.random.PRNGKey(0)
    kx, kw, kb = jax.random.split(key, 3)
    x = jax.random.normal(kx, (N, num_filter, L), dtype=jnp.float32)

    run = jax.jit(functools.partial(
        dirac_delta_trans_conv,
        kernel_size=kernel_size, stride=stride, output_padding=4, use_bias=True))

    # 1) The module's actual (frozen Dirac-delta) parameters.
    kernel1d, bias = init_params(kernel_size, num_filter, use_bias=True)
    out = jax.block_until_ready(run(x, kernel1d, bias))
    ref = _reference_numpy(x, kernel1d, bias, kernel_size, stride, output_padding=4)
    np.testing.assert_allclose(np.asarray(out), ref, rtol=1e-5, atol=1e-5)

    # 2) Sanity check of the general-weight path with the same kernel.
    kernel1d_r = jax.random.normal(kw, (num_filter, 1, kernel_size), dtype=jnp.float32)
    bias_r = jax.random.normal(kb, (1,), dtype=jnp.float32)
    out_r = jax.block_until_ready(run(x, kernel1d_r, bias_r))
    ref_r = _reference_numpy(x, kernel1d_r, bias_r, kernel_size, stride, output_padding=4)
    np.testing.assert_allclose(np.asarray(out_r), ref_r, rtol=1e-5, atol=1e-5)

    L_out = (L - 1) * stride - 2 * (kernel_size // 2) + (kernel_size - 1) + 4 + 1
    assert out.shape == (N, 1, L_out)
    print("KERNEL_OK")
</pallas_src>

<mosaic_0001>
module attributes {stable_mosaic.version = 11 : i64} {
  func.func @kernel(%arg0: i32, %arg1: memref<2x4x17xf32, #tpu.memory_space<vmem>>, %arg2: memref<20xf32, #tpu.memory_space<smem>>, %arg3: memref<1xf32, #tpu.memory_space<smem>>, %arg4: memref<2x5x16xf32, #tpu.memory_space<vmem>>) attributes {dimension_semantics = [#tpu.dimension_semantics<parallel>], iteration_bounds = array<i64: 1>, scalar_prefetch = 0 : i64, scratch_operands = 0 : i64, tpu.core_type = #tpu.core_type<tc>, window_params = [{transform_indices = @transform_0, window_bounds = array<i64: 2, 4, 17>}, {transform_indices = @transform_1, window_bounds = array<i64: 20>}, {transform_indices = @transform_2, window_bounds = array<i64: 1>}, {transform_indices = @transform_3, window_bounds = array<i64: 2, 5, 16>}]} {
    %c0 = arith.constant 0 : index
    %0 = memref.load %arg3[%c0] : memref<1xf32, #tpu.memory_space<smem>>
    %c0_0 = arith.constant 0 : index
    %c0_1 = arith.constant 0 : index
    %c0_2 = arith.constant 0 : index
    %1 = vector.load %arg1[%c0_0, %c0_1, %c0_2] : memref<2x4x17xf32, #tpu.memory_space<vmem>>, vector<2x4x16xf32>
    %c0_3 = arith.constant 0 : index
    %c0_4 = arith.constant 0 : index
    %c1 = arith.constant 1 : index
    %2 = vector.load %arg1[%c0_3, %c0_4, %c1] : memref<2x4x17xf32, #tpu.memory_space<vmem>>, vector<2x4x16xf32>
    %cst = arith.constant 0.000000e+00 : f32
    %3 = vector.broadcast %cst : f32 to vector<2x16xf32>
    %c0_5 = arith.constant 0 : index
    %4 = memref.load %arg2[%c0_5] : memref<20xf32, #tpu.memory_space<smem>>
    %5 = vector.extract_strided_slice %1 {offsets = [0, 0, 0], sizes = [2, 1, 16], strides = [1, 1, 1]} : vector<2x4x16xf32> to vector<2x1x16xf32>
    %6 = vector.shape_cast %5 : vector<2x1x16xf32> to vector<2x16xf32>
    %7 = vector.broadcast %4 : f32 to vector<2x16xf32>
    %8 = arith.mulf %7, %6 : vector<2x16xf32>
    %9 = arith.addf %3, %8 : vector<2x16xf32>
    %c1_6 = arith.constant 1 : index
    %10 = memref.load %arg2[%c1_6] : memref<20xf32, #tpu.memory_space<smem>>
    %11 = vector.extract_strided_slice %1 {offsets = [0, 1, 0], sizes = [2, 1, 16], strides = [1, 1, 1]} : vector<2x4x16xf32> to vector<2x1x16xf32>
    %12 = vector.shape_cast %11 : vector<2x1x16xf32> to vector<2x16xf32>
    %13 = vector.broadcast %10 : f32 to vector<2x16xf32>
    %14 = arith.mulf %13, %12 : vector<2x16xf32>
    %15 = arith.addf %9, %14 : vector<2x16xf32>
    %c2 = arith.constant 2 : index
    %16 = memref.load %arg2[%c2] : memref<20xf32, #tpu.memory_space<smem>>
    %17 = vector.extract_strided_slice %1 {offsets = [0, 2, 0], sizes = [2, 1, 16], strides = [1, 1, 1]} : vector<2x4x16xf32> to vector<2x1x16xf32>
    %18 = vector.shape_cast %17 : vector<2x1x16xf32> to vector<2x16xf32>
    %19 = vector.broadcast %16 : f32 to vector<2x16xf32>
    %20 = arith.mulf %19, %18 : vector<2x16xf32>
    %21 = arith.addf %15, %20 : vector<2x16xf32>
    %c3 = arith.constant 3 : index
    %22 = memref.load %arg2[%c3] : memref<20xf32, #tpu.memory_space<smem>>
    %23 = vector.extract_strided_slice %1 {offsets = [0, 3, 0], sizes = [2, 1, 16], strides = [1, 1, 1]} : vector<2x4x16xf32> to vector<2x1x16xf32>
    %24 = vector.shape_cast %23 : vector<2x1x16xf32> to vector<2x16xf32>
    %25 = vector.broadcast %22 : f32 to vector<2x16xf32>
    %26 = arith.mulf %25, %24 : vector<2x16xf32>
    %27 = arith.addf %21, %26 : vector<2x16xf32>
    %28 = vector.broadcast %0 : f32 to vector<2x16xf32>
    %29 = arith.addf %27, %28 : vector<2x16xf32>
    %c0_7 = arith.constant 0 : index
    %c0_8 = arith.constant 0 : index
    %c0_9 = arith.constant 0 : index
    %30 = vector.load %arg4[%c0_7, %c0_8, %c0_9] : memref<2x5x16xf32, #tpu.memory_space<vmem>>, vector<2x1x16xf32>
    %31 = vector.shape_cast %30 : vector<2x1x16xf32> to vector<2x16xf32>
    %32 = vector.shape_cast %29 : vector<2x16xf32> to vector<2x1x16xf32>
    tpu.vector_store %arg4[%c0_7, %c0_8, %c0_9], %32 {strides = array<i32>} : memref<2x5x16xf32, #tpu.memory_space<vmem>>, vector<2x1x16xf32>,
    %cst_10 = arith.constant 0.000000e+00 : f32
    %33 = vector.broadcast %cst_10 : f32 to vector<2x16xf32>
    %c4 = arith.constant 4 : index
    %34 = memref.load %arg2[%c4] : memref<20xf32, #tpu.memory_space<smem>>
    %35 = vector.extract_strided_slice %1 {offsets = [0, 0, 0], sizes = [2, 1, 16], strides = [1, 1, 1]} : vector<2x4x16xf32> to vector<2x1x16xf32>
    %36 = vector.shape_cast %35 : vector<2x1x16xf32> to vector<2x16xf32>
    %37 = vector.broadcast %34 : f32 to vector<2x16xf32>
    %38 = arith.mulf %37, %36 : vector<2x16xf32>
    %39 = arith.addf %33, %38 : vector<2x16xf32>
    %c5 = arith.constant 5 : index
    %40 = memref.load %arg2[%c5] : memref<20xf32, #tpu.memory_space<smem>>
    %41 = vector.extract_strided_slice %1 {offsets = [0, 1, 0], sizes = [2, 1, 16], strides = [1, 1, 1]} : vector<2x4x16xf32> to vector<2x1x16xf32>
    %42 = vector.shape_cast %41 : vector<2x1x16xf32> to vector<2x16xf32>
    %43 = vector.broadcast %40 : f32 to vector<2x16xf32>
    %44 = arith.mulf %43, %42 : vector<2x16xf32>
    %45 = arith.addf %39, %44 : vector<2x16xf32>
    %c6 = arith.constant 6 : index
    %46 = memref.load %arg2[%c6] : memref<20xf32, #tpu.memory_space<smem>>
    %47 = vector.extract_strided_slice %1 {offsets = [0, 2, 0], sizes = [2, 1, 16], strides = [1, 1, 1]} : vector<2x4x16xf32> to vector<2x1x16xf32>
    %48 = vector.shape_cast %47 : vector<2x1x16xf32> to vector<2x16xf32>
    %49 = vector.broadcast %46 : f32 to vector<2x16xf32>
    %50 = arith.mulf %49, %48 : vector<2x16xf32>
    %51 = arith.addf %45, %50 : vector<2x16xf32>
    %c7 = arith.constant 7 : index
    %52 = memref.load %arg2[%c7] : memref<20xf32, #tpu.memory_space<smem>>
    %53 = vector.extract_strided_slice %1 {offsets = [0, 3, 0], sizes = [2, 1, 16], strides = [1, 1, 1]} : vector<2x4x16xf32> to vector<2x1x16xf32>
    %54 = vector.shape_cast %53 : vector<2x1x16xf32> to vector<2x16xf32>
    %55 = vector.broadcast %52 : f32 to vector<2x16xf32>
    %56 = arith.mulf %55, %54 : vector<2x16xf32>
    %57 = arith.addf %51, %56 : vector<2x16xf32>
    %58 = vector.broadcast %0 : f32 to vector<2x16xf32>
    %59 = arith.addf %57, %58 : vector<2x16xf32>
    %c0_11 = arith.constant 0 : index
    %c1_12 = arith.constant 1 : index
    %c0_13 = arith.constant 0 : index
    %60 = vector.load %arg4[%c0_11, %c1_12, %c0_13] : memref<2x5x16xf32, #tpu.memory_space<vmem>>, vector<2x1x16xf32>
    %61 = vector.shape_cast %60 : vector<2x1x16xf32> to vector<2x16xf32>
    %62 = vector.shape_cast %59 : vector<2x16xf32> to vector<2x1x16xf32>
    tpu.vector_store %arg4[%c0_11, %c1_12, %c0_13], %62 {strides = array<i32>} : memref<2x5x16xf32, #tpu.memory_space<vmem>>, vector<2x1x16xf32>,
    %cst_14 = arith.constant 0.000000e+00 : f32
    %63 = vector.broadcast %cst_14 : f32 to vector<2x16xf32>
    %c8 = arith.constant 8 : index
    %64 = memref.load %arg2[%c8] : memref<20xf32, #tpu.memory_space<smem>>
    %65 = vector.extract_strided_slice %1 {offsets = [0, 0, 0], sizes = [2, 1, 16], strides = [1, 1, 1]} : vector<2x4x16xf32> to vector<2x1x16xf32>
    %66 = vector.shape_cast %65 : vector<2x1x16xf32> to vector<2x16xf32>
    %67 = vector.broadcast %64 : f32 to vector<2x16xf32>
    %68 = arith.mulf %67, %66 : vector<2x16xf32>
    %69 = arith.addf %63, %68 : vector<2x16xf32>
    %c9 = arith.constant 9 : index
    %70 = memref.load %arg2[%c9] : memref<20xf32, #tpu.memory_space<smem>>
    %71 = vector.extract_strided_slice %1 {offsets = [0, 1, 0], sizes = [2, 1, 16], strides = [1, 1, 1]} : vector<2x4x16xf32> to vector<2x1x16xf32>
    %72 = vector.shape_cast %71 : vector<2x1x16xf32> to vector<2x16xf32>
    %73 = vector.broadcast %70 : f32 to vector<2x16xf32>
    %74 = arith.mulf %73, %72 : vector<2x16xf32>
    %75 = arith.addf %69, %74 : vector<2x16xf32>
    %c10 = arith.constant 10 : index
    %76 = memref.load %arg2[%c10] : memref<20xf32, #tpu.memory_space<smem>>
    %77 = vector.extract_strided_slice %1 {offsets = [0, 2, 0], sizes = [2, 1, 16], strides = [1, 1, 1]} : vector<2x4x16xf32> to vector<2x1x16xf32>
    %78 = vector.shape_cast %77 : vector<2x1x16xf32> to vector<2x16xf32>
    %79 = vector.broadcast %76 : f32 to vector<2x16xf32>
    %80 = arith.mulf %79, %78 : vector<2x16xf32>
    %81 = arith.addf %75, %80 : vector<2x16xf32>
    %c11 = arith.constant 11 : index
    %82 = memref.load %arg2[%c11] : memref<20xf32, #tpu.memory_space<smem>>
    %83 = vector.extract_strided_slice %1 {offsets = [0, 3, 0], sizes = [2, 1, 16], strides = [1, 1, 1]} : vector<2x4x16xf32> to vector<2x1x16xf32>
    %84 = vector.shape_cast %83 : vector<2x1x16xf32> to vector<2x16xf32>
    %85 = vector.broadcast %82 : f32 to vector<2x16xf32>
    %86 = arith.mulf %85, %84 : vector<2x16xf32>
    %87 = arith.addf %81, %86 : vector<2x16xf32>
    %88 = vector.broadcast %0 : f32 to vector<2x16xf32>
    %89 = arith.addf %87, %88 : vector<2x16xf32>
    %c0_15 = arith.constant 0 : index
    %c2_16 = arith.constant 2 : index
    %c0_17 = arith.constant 0 : index
    %90 = vector.load %arg4[%c0_15, %c2_16, %c0_17] : memref<2x5x16xf32, #tpu.memory_space<vmem>>, vector<2x1x16xf32>
    %91 = vector.shape_cast %90 : vector<2x1x16xf32> to vector<2x16xf32>
    %92 = vector.shape_cast %89 : vector<2x16xf32> to vector<2x1x16xf32>
    tpu.vector_store %arg4[%c0_15, %c2_16, %c0_17], %92 {strides = array<i32>} : memref<2x5x16xf32, #tpu.memory_space<vmem>>, vector<2x1x16xf32>,
    %cst_18 = arith.constant 0.000000e+00 : f32
    %93 = vector.broadcast %cst_18 : f32 to vector<2x16xf32>
    %c12 = arith.constant 12 : index
    %94 = memref.load %arg2[%c12] : memref<20xf32, #tpu.memory_space<smem>>
    %95 = vector.extract_strided_slice %2 {offsets = [0, 0, 0], sizes = [2, 1, 16], strides = [1, 1, 1]} : vector<2x4x16xf32> to vector<2x1x16xf32>
    %96 = vector.shape_cast %95 : vector<2x1x16xf32> to vector<2x16xf32>
    %97 = vector.broadcast %94 : f32 to vector<2x16xf32>
    %98 = arith.mulf %97, %96 : vector<2x16xf32>
    %99 = arith.addf %93, %98 : vector<2x16xf32>
    %c13 = arith.constant 13 : index
    %100 = memref.load %arg2[%c13] : memref<20xf32, #tpu.memory_space<smem>>
    %101 = vector.extract_strided_slice %2 {offsets = [0, 1, 0], sizes = [2, 1, 16], strides = [1, 1, 1]} : vector<2x4x16xf32> to vector<2x1x16xf32>
    %102 = vector.shape_cast %101 : vector<2x1x16xf32> to vector<2x16xf32>
    %103 = vector.broadcast %100 : f32 to vector<2x16xf32>
    %104 = arith.mulf %103, %102 : vector<2x16xf32>
    %105 = arith.addf %99, %104 : vector<2x16xf32>
    %c14 = arith.constant 14 : index
    %106 = memref.load %arg2[%c14] : memref<20xf32, #tpu.memory_space<smem>>
    %107 = vector.extract_strided_slice %2 {offsets = [0, 2, 0], sizes = [2, 1, 16], strides = [1, 1, 1]} : vector<2x4x16xf32> to vector<2x1x16xf32>
    %108 = vector.shape_cast %107 : vector<2x1x16xf32> to vector<2x16xf32>
    %109 = vector.broadcast %106 : f32 to vector<2x16xf32>
    %110 = arith.mulf %109, %108 : vector<2x16xf32>
    %111 = arith.addf %105, %110 : vector<2x16xf32>
    %c15 = arith.constant 15 : index
    %112 = memref.load %arg2[%c15] : memref<20xf32, #tpu.memory_space<smem>>
    %113 = vector.extract_strided_slice %2 {offsets = [0, 3, 0], sizes = [2, 1, 16], strides = [1, 1, 1]} : vector<2x4x16xf32> to vector<2x1x16xf32>
    %114 = vector.shape_cast %113 : vector<2x1x16xf32> to vector<2x16xf32>
    %115 = vector.broadcast %112 : f32 to vector<2x16xf32>
    %116 = arith.mulf %115, %114 : vector<2x16xf32>
    %117 = arith.addf %111, %116 : vector<2x16xf32>
    %118 = vector.broadcast %0 : f32 to vector<2x16xf32>
    %119 = arith.addf %117, %118 : vector<2x16xf32>
    %c0_19 = arith.constant 0 : index
    %c3_20 = arith.constant 3 : index
    %c0_21 = arith.constant 0 : index
    %120 = vector.load %arg4[%c0_19, %c3_20, %c0_21] : memref<2x5x16xf32, #tpu.memory_space<vmem>>, vector<2x1x16xf32>
    %121 = vector.shape_cast %120 : vector<2x1x16xf32> to vector<2x16xf32>
    %122 = vector.shape_cast %119 : vector<2x16xf32> to vector<2x1x16xf32>
    tpu.vector_store %arg4[%c0_19, %c3_20, %c0_21], %122 {strides = array<i32>} : memref<2x5x16xf32, #tpu.memory_space<vmem>>, vector<2x1x16xf32>,
    %cst_22 = arith.constant 0.000000e+00 : f32
    %123 = vector.broadcast %cst_22 : f32 to vector<2x16xf32>
    %c16 = arith.constant 16 : index
    %124 = memref.load %arg2[%c16] : memref<20xf32, #tpu.memory_space<smem>>
    %125 = vector.extract_strided_slice %2 {offsets = [0, 0, 0], sizes = [2, 1, 16], strides = [1, 1, 1]} : vector<2x4x16xf32> to vector<2x1x16xf32>
    %126 = vector.shape_cast %125 : vector<2x1x16xf32> to vector<2x16xf32>
    %127 = vector.broadcast %124 : f32 to vector<2x16xf32>
    %128 = arith.mulf %127, %126 : vector<2x16xf32>
    %129 = arith.addf %123, %128 : vector<2x16xf32>
    %c17 = arith.constant 17 : index
    %130 = memref.load %arg2[%c17] : memref<20xf32, #tpu.memory_space<smem>>
    %131 = vector.extract_strided_slice %2 {offsets = [0, 1, 0], sizes = [2, 1, 16], strides = [1, 1, 1]} : vector<2x4x16xf32> to vector<2x1x16xf32>
    %132 = vector.shape_cast %131 : vector<2x1x16xf32> to vector<2x16xf32>
    %133 = vector.broadcast %130 : f32 to vector<2x16xf32>
    %134 = arith.mulf %133, %132 : vector<2x16xf32>
    %135 = arith.addf %129, %134 : vector<2x16xf32>
    %c18 = arith.constant 18 : index
    %136 = memref.load %arg2[%c18] : memref<20xf32, #tpu.memory_space<smem>>
    %137 = vector.extract_strided_slice %2 {offsets = [0, 2, 0], sizes = [2, 1, 16], strides = [1, 1, 1]} : vector<2x4x16xf32> to vector<2x1x16xf32>
    %138 = vector.shape_cast %137 : vector<2x1x16xf32> to vector<2x16xf32>
    %139 = vector.broadcast %136 : f32 to vector<2x16xf32>
    %140 = arith.mulf %139, %138 : vector<2x16xf32>
    %141 = arith.addf %135, %140 : vector<2x16xf32>
    %c19 = arith.constant 19 : index
    %142 = memref.load %arg2[%c19] : memref<20xf32, #tpu.memory_space<smem>>
    %143 = vector.extract_strided_slice %2 {offsets = [0, 3, 0], sizes = [2, 1, 16], strides = [1, 1, 1]} : vector<2x4x16xf32> to vector<2x1x16xf32>
    %144 = vector.shape_cast %143 : vector<2x1x16xf32> to vector<2x16xf32>
    %145 = vector.broadcast %142 : f32 to vector<2x16xf32>
    %146 = arith.mulf %145, %144 : vector<2x16xf32>
    %147 = arith.addf %141, %146 : vector<2x16xf32>
    %148 = vector.broadcast %0 : f32 to vector<2x16xf32>
    %149 = arith.addf %147, %148 : vector<2x16xf32>
    %c0_23 = arith.constant 0 : index
    %c4_24 = arith.constant 4 : index
    %c0_25 = arith.constant 0 : index
    %150 = vector.load %arg4[%c0_23, %c4_24, %c0_25] : memref<2x5x16xf32, #tpu.memory_space<vmem>>, vector<2x1x16xf32>
    %151 = vector.shape_cast %150 : vector<2x1x16xf32> to vector<2x16xf32>
    %152 = vector.shape_cast %149 : vector<2x16xf32> to vector<2x1x16xf32>
    tpu.vector_store %arg4[%c0_23, %c4_24, %c0_25], %152 {strides = array<i32>} : memref<2x5x16xf32, #tpu.memory_space<vmem>>, vector<2x1x16xf32>,
    return
  }
  func.func @transform_0(%arg0: i32) -> (i32, i32, i32) {
    %c0_i32 = arith.constant 0 : i32
    %c0_i32_0 = arith.constant 0 : i32
    %c0_i32_1 = arith.constant 0 : i32
    return %arg0, %c0_i32, %c0_i32_0 : i32, i32, i32
  }
  func.func @transform_1(%arg0: i32) -> i32 {
    %c0_i32 = arith.constant 0 : i32
    %c0_i32_0 = arith.constant 0 : i32
    return %c0_i32 : i32
  }
  func.func @transform_2(%arg0: i32) -> i32 {
    %c0_i32 = arith.constant 0 : i32
    %c0_i32_0 = arith.constant 0 : i32
    return %c0_i32 : i32
  }
  func.func @transform_3(%arg0: i32) -> (i32, i32, i32) {
    %c0_i32 = arith.constant 0 : i32
    %c0_i32_0 = arith.constant 0 : i32
    %c0_i32_1 = arith.constant 0 : i32
    return %arg0, %c0_i32, %c0_i32_0 : i32, i32, i32
  }
}

</mosaic_0001>

<bundles_post_ra>
// kernel: dirac_delta_trans_conv.1
= control target key start
LH: loop header
LB: loop body
LE: loop exit
PB: predicated region body
PF: predicated region fallthrough
CT: control target
= control target key end

     0   :  { %9 = vsyncpa [#allocation4], 0  ;;  %s514_s0 = inlined_call_operand.vmem [shape: f32[2,4,17], index: 0, kind: input, shape index: {}]   ;;  %s515_s1 = inlined_call_operand.vmem [shape: f32[20], index: 1, kind: input, shape index: {}]   ;;  %s516_s2 = inlined_call_operand.<no memory space> [shape: f32[1], index: 2, kind: input, shape index: {}]   ;;  %s517_s3 = inlined_call_operand.vmem [shape: f32[2,5,16], index: 3, kind: output, shape index: {}]  }
   0x1   :  { %s18_s14 = sshll.u32 %s515_s1, 4  ;;  %s19_s14 = int_to_ptr.vmem [resolvable:$true] %s18_s14 }
   0x2   :  { %s305_s15 = scalar_lea.vmem %s19_s14, 16  ;;  %p310_p1 = scmp.lt.s32.totalorder %s19_s14, %s19_s14 }
   0x3   :  { %p306_p0 = scmp.ne.s32.totalorder %s19_s14, %s305_s15  ;;  %p311_p2 = scmp.lt.s32.totalorder %s305_s15, %s305_s15 }
   0x5   :  { %p312_p3 = por %p311_p2, %p310_p1 }
   0x7   :  { %p313_p4 = pnand %p312_p3, %p306_p0 }
   0x9   :  { %316 = shalt.err (!%p313_p4)
}
   0xa   :  { %s319_s16 = smov [#allocation3]  }
   0xb   :  { %21 = dma.vmem_to_smem %s19_s14, 16, %s319_s16, [#allocation4]  }
   0xc   :  { %317 = dma.done.wait [#allocation4], 16  }
   0xd   :  { %318 = vsyncadd [#allocation4], 4294967280 }
   0xe   :  { %27 = sfence }
   0xf   :  { %s31_s17 = sld [smem:[#allocation3]]  ;;  %v355_v1 = vld [vmem:[%s514_s0] sm:$0xf]  ;;  %v360_v2 = vld [vmem:[%s514_s0 + $0x4] sm:$0xf]  ;;  %v365_v4 = vstv %s516_s2  ;;  %vm76_vm0 = vcmask 122880  }
  0x10   :  { %s284_s18 = sld [smem:[#allocation3 + $0x1]] }
  0x11   :  { %s285_s19 = sld [smem:[#allocation3 + $0x2]] }
  0x12   :  { %s344_s20 = sld [smem:[#allocation3 + $0x3]] }
  0x13   :  { %s346_s1 = sld [smem:[#allocation3 + $0x4]] }
  0x14   :  { %s348_s21 = sld [smem:[#allocation3 + $0x5]] }
  0x15   :  { %v32_v0 = vstv %s31_s17  ;;  %s350_s22 = sld [smem:[#allocation3 + $0x6]] }
  0x16   :  { %v38_v3 = vstv %s284_s18  ;;  %s367_s29 = sld [smem:[#allocation3 + $0x7]]  ;;  %v34_v5 = vmul.f32 %v32_v0, %v360_v2  ;;  %v33_v11 = vmul.f32 %v32_v0, %v355_v1 }
  0x17   :  { %v40_v6 = vmul.f32 %v38_v3, %v360_v2  ;;  %v50_v7 = vstv %s285_s19  ;;  %s371_s30 = sld [smem:[#allocation3 + $0x8]]  ;;  %v39_v8 = vmul.f32 %v38_v3, %v355_v1 }
  0x18   :  { %v52_v9 = vmul.f32 %v50_v7, %v360_v2  ;;  %v62_v10 = vstv %s344_s20  ;;  %s376_s0 = sld [smem:[#allocation3 + $0x9]]  ;;  %v51_v12 = vmul.f32 %v50_v7, %v355_v1 }
  0x19   :  { %v44_v13 = vrot.slane %v40_v6, 1  ;;  %v64_v14 = vmul.f32 %v62_v10, %v360_v2  ;;  %v80_v15 = vstv %s346_s1  ;;  %s382_s2 = sld [smem:[#allocation3 + $0xa]]  ;;  %v43_v16 = vrot.slane %v39_v8, 1  ;;  %s320_s1 = smov 127  }
  0x1a   :  { %v56_v17 = vrot.slane %v52_v9, 2  ;;  %v82_v18 = vmul.f32 %v80_v15, %v360_v2  ;;  %v86_v19 = vstv %s348_s21  ;;  %s386_s4 = sld [smem:[#allocation3 + $0xb]]  ;;  %v55_v20 = vrot.slane %v51_v12, 2 }
  0x1b   :  { %v48_v21 = vadd.f32 %v44_v13, %v34_v5  ;;  %v68_v22 = vrot.slane %v64_v14, 3  ;;  %v88_v23 = vmul.f32 %v86_v19, %v360_v2  ;;  %v98_v24 = vstv %s350_s22  ;;  %s392_s5 = sld [smem:[#allocation3 + $0x10]] }
  0x1c   :  { %v100_v25 = vmul.f32 %v98_v24, %v360_v2  ;;  %v110_v26 = vstv %s367_s29  ;;  %s396_s6 = sld [smem:[#allocation3 + $0x11]]  ;;  %v47_v27 = vadd.f32 %v43_v16, %v33_v11  ;;  %v63_v28 = vmul.f32 %v62_v10, %v355_v1 }
  0x1d   :  { %v60_v29 = vadd.f32 %v56_v17, %v48_v21  ;;  %v92_v30 = vrot.slane %v88_v23, 1  ;;  %v112_v31 = vmul.f32 %v110_v26, %v360_v2  ;;  %v126_v32 = vstv %s371_s30  ;;  %s401_s7 = sld [smem:[#allocation3 + $0x12]] }
  0x1e   :  { %v104_v33 = vrot.slane %v100_v25, 2  ;;  %v128_v34 = vmul.f32 %v126_v32, %v360_v2  ;;  %v132_v35 = vstv %s376_s0  ;;  %s405_s8 = sld [smem:[#allocation3 + $0x13]]  ;;  %v59_v36 = vadd.f32 %v55_v20, %v47_v27 }
  0x1f   :  { %v72_v37 = vadd.f32 %v68_v22, %v60_v29  ;;  %v96_v38 = vadd.f32 %v92_v30, %v82_v18  ;;  %v116_v39 = vrot.slane %v112_v31, 3  ;;  %v134_v40 = vmul.f32 %v132_v35, %v360_v2  ;;  %s417_s9 = sld [smem:[#allocation3 + $0xc]] }
  0x20   :  { %v144_v41 = vstv %s382_s2  ;;  %v156_v42 = vstv %s386_s4  ;;  %v67_v43 = vrot.slane %v63_v28, 3  ;;  %v81_v44 = vmul.f32 %v80_v15, %v355_v1  ;;  %s429_s12 = sld [smem:[#allocation3 + $0xd]] }
  0x21   :  { %v75_v45 = vadd.f32 %v365_v4, %v72_v37  ;;  %v108_v46 = vadd.f32 %v104_v33, %v96_v38  ;;  %v138_v47 = vrot.slane %v134_v40, 1  ;;  %v146_v48 = vmul.f32 %v144_v41, %v360_v2  ;;  %s436_s13 = sld [smem:[#allocation3 + $0xe]] }
  0x22   :  { %v158_v49 = vmul.f32 %v156_v42, %v360_v2  ;;  %v226_v50 = vstv %s392_s5  ;;  %v232_v51 = vstv %s396_s6  ;;  %v71_v52 = vadd.f32 %v67_v43, %v59_v36  ;;  %s445_s14 = sld [smem:[#allocation3 + $0xf]] }
  0x23   :  { %v120_v53 = vadd.f32 %v116_v39, %v108_v46  ;;  %v142_v54 = vadd.f32 %v138_v47, %v128_v34  ;;  %v150_v55 = vrot.slane %v146_v48, 2  ;;  %v227_v56 = vmul.f32 %v226_v50, %v355_v1  ;;  %78 = vst.msk [vmem:[%s517_s3 + $0x8] sm:$0x1] %vm76_vm0, %v75_v45 }
  0x24   :  { %v162_v57 = vrot.slane %v158_v49, 3  ;;  %v228_v58 = vmul.f32 %v226_v50, %v360_v2  ;;  %v233_v59 = vmul.f32 %v232_v51, %v355_v1  ;;  %v234_v60 = vmul.f32 %v232_v51, %v360_v2 }
  0x25   :  { %v122_v61 = vadd.f32 %v120_v53, %v365_v4  ;;  %v154_v62 = vadd.f32 %v150_v55, %v142_v54  ;;  %v244_v63 = vstv %s401_s7  ;;  %v256_v0 = vstv %s405_s8 }
  0x26   :  { %v237_v3 = vrot.slane %v233_v59, 1  ;;  %v245_v5 = vmul.f32 %v244_v63, %v355_v1  ;;  %v433_v6 = vmul.f32 %v244_v63, %v360_v2  ;;  %v257_v7 = vmul.f32 %v256_v0, %v355_v1 }
  0x27   :  { %v166_v8 = vadd.f32 %v162_v57, %v154_v62  ;;  %v439_v9 = vmul.f32 %v256_v0, %v360_v2  ;;  %v74_v10 = vadd.f32 %v365_v4, %v71_v52  ;;  %v87_v11 = vmul.f32 %v86_v19, %v355_v1  ;;  %124 = vst.msk [vmem:[%s517_s3 + $0x9] sm:$0x1] %vm76_vm0, %v122_v61 }
  0x28   :  { %v241_v12 = vadd.f32 %v237_v3, %v227_v56  ;;  %v249_v13 = vrot.slane %v245_v5, 2  ;;  %v261_v14 = vrot.slane %v257_v7, 3  ;;  %v99_v15 = vmul.f32 %v98_v24, %v355_v1 }
  0x29   :  { %v168_v16 = vadd.f32 %v166_v8, %v365_v4  ;;  %v91_v17 = vrot.slane %v87_v11, 1  ;;  %v111_v18 = vmul.f32 %v110_v26, %v355_v1  ;;  %v127_v19 = vmul.f32 %v126_v32, %v355_v1  ;;  %77 = vst.msk [vmem:[%s517_s3] sm:$0x1] %vm76_vm0, %v74_v10 }
  0x2a   :  { %v253_v20 = vadd.f32 %v249_v13, %v241_v12  ;;  %v103_v21 = vrot.slane %v99_v15, 2  ;;  %v133_v22 = vmul.f32 %v132_v35, %v355_v1  ;;  %v145_v23 = vmul.f32 %v144_v41, %v355_v1 }
  0x2b   :  { %v95_v24 = vadd.f32 %v91_v17, %v81_v44  ;;  %v115_v25 = vrot.slane %v111_v18, 3  ;;  %v157_v27 = vmul.f32 %v156_v42, %v355_v1  ;;  %v172_v26 = vstv %s417_s9  ;;  %170 = vst.msk [vmem:[%s517_s3 + $0xa] sm:$0x1] %vm76_vm0, %v168_v16 }
  0x2c   :  { %v265_v28 = vadd.f32 %v261_v14, %v253_v20  ;;  %v137_v29 = vrot.slane %v133_v22, 1  ;;  %v149_v30 = vrot.slane %v145_v23, 2  ;;  %v173_v31 = vmul.f32 %v172_v26, %v355_v1 }
  0x2d   :  { %v107_v32 = vadd.f32 %v103_v21, %v95_v24  ;;  %v161_v33 = vrot.slane %v157_v27, 3  ;;  %v174_v34 = vmul.f32 %v172_v26, %v360_v2  ;;  %v178_v35 = vstv %s429_s12 }
  0x2e   :  { %v267_v36 = vadd.f32 %v265_v28, %v365_v4  ;;  %v141_v37 = vadd.f32 %v137_v29, %v127_v19  ;;  %v179_v38 = vmul.f32 %v178_v35, %v355_v1  ;;  %v180_v39 = vmul.f32 %v178_v35, %v360_v2 }
  0x2f   :  { %v119_v40 = vadd.f32 %v115_v25, %v107_v32  ;;  %v190_v41 = vstv %s436_s13  ;;  %v202_v42 = vstv %s445_s14  ;;  %v238_v43 = vrot.slane %v234_v60, 1 }
  0x30   :  { %271 = vrot.lane.b32.xlu1 %v267_v36, %s320_s1  ;;  %v153_v44 = vadd.f32 %v149_v30, %v141_v37  ;;  %v183_v45 = vrot.slane %v179_v38, 1  ;;  %v191_v46 = vmul.f32 %v190_v41, %v355_v1  ;;  %v192_v47 = vmul.f32 %v190_v41, %v360_v2 }
  0x31   :  { %v121_v48 = vadd.f32 %v119_v40, %v365_v4  ;;  %v203_v49 = vmul.f32 %v202_v42, %v355_v1  ;;  %v204_v50 = vmul.f32 %v202_v42, %v360_v2  ;;  %v242_v51 = vadd.f32 %v238_v43, %v228_v58 }
  0x32   :  { %v165_v52 = vadd.f32 %v161_v33, %v153_v44  ;;  %v187_v53 = vadd.f32 %v183_v45, %v173_v31  ;;  %v195_v54 = vrot.slane %v191_v46, 2  ;;  %v250_v55 = vrot.slane %v433_v6, 2 }
  0x33   :  { %v207_v56 = vrot.slane %v203_v49, 3  ;;  %v262_v57 = vrot.slane %v439_v9, 3  ;;  %v184_v59 = vrot.slane %v180_v39, 1  ;;  %v196_v60 = vrot.slane %v192_v47, 2  ;;  %123 = vst.msk [vmem:[%s517_s3 + $0x1] sm:$0x1] %vm76_vm0, %v121_v48 }
  0x34   :  { %v167_v1 = vadd.f32 %v165_v52, %v365_v4  ;;  %v199_v61 = vadd.f32 %v195_v54, %v187_v53  ;;  %v254_v2 = vadd.f32 %v250_v55, %v242_v51  ;;  %v208_v62 = vrot.slane %v204_v50, 3 }
  0x35   :  { %v188_v58 = vadd.f32 %v184_v59, %v174_v34 }
  0x36   :  { %v211_v63 = vadd.f32 %v207_v56, %v199_v61  ;;  %v266_v0 = vadd.f32 %v262_v57, %v254_v2  ;;  %169 = vst.msk [vmem:[%s517_s3 + $0x2] sm:$0x1] %vm76_vm0, %v167_v1 }
  0x37   :  { %v200_v3 = vadd.f32 %v196_v60, %v188_v58 }
  0x38   :  { %v213_v5 = vadd.f32 %v211_v63, %v365_v4  ;;  %v268_v6 = vadd.f32 %v266_v0, %v365_v4 }
  0x39   :  { %v212_v7 = vadd.f32 %v208_v62, %v200_v3 }
  0x3a   :  { %217 = vrot.lane.b32.xlu0 %v213_v5, %s320_s1  ;;  %273 = vrot.lane.b32.xlu1 %v268_v6, %s320_s1 }
  0x3b   :  { %v214_v8 = vadd.f32 %v212_v7, %v365_v4 }
  0x3e   :  { %219 = vrot.lane.b32.xlu0 %v214_v8, %s320_s1 }
  0xa2   :  { %v272_v9 = vpop.permute.xlu1 %271 }
  0xa3   :  { %277 = vst.msk [vmem:[%s517_s3 + $0x4] sm:$0x1] %vm76_vm0, %v272_v9 }
  0xac   :  { %v218_v10 = vpop.permute.xlu0 %217  ;;  %v274_v11 = vpop.permute.xlu1 %273 }
  0xad   :  { %223 = vst.msk [vmem:[%s517_s3 + $0x3] sm:$0x1] %vm76_vm0, %v218_v10  ;;  %278 = vst.msk [vmem:[%s517_s3 + $0xc] sm:$0x1] %vm76_vm0, %v274_v11 }
  0xb0   :  { %v220_v4 = vpop.permute.xlu0 %219 }
  0xb1   :  { %224 = vst.msk [vmem:[%s517_s3 + $0xb] sm:$0x1] %vm76_vm0, %v220_v4 }
  0xb2   :  { %283 = vsyncpa [#allocation4], 1 }

</bundles_post_ra>
